<compile_context>
chip_gen: v7x
topology: tpu7x:2x2x1
jax: 0.10.0
libtpu: 0.0.40
codegen_flags: <defaults>
</compile_context>

<pallas_src>
import functools

import jax
import jax.numpy as jnp
from jax.experimental import pallas as pl
from jax.experimental.pallas import tpu as pltpu


def channel_attention_kernel(x_ref, w1_ref, w2_ref, o_ref, sum_acc, max_acc,
                             *, inv_hw):
    # x_ref:   (1, C, THW)   current spatial tile of one image (NCHW layout)
    # w1_ref:  (Cr, C)       fc1 weight (1x1 conv == dense over channels)
    # w2_ref:  (C, Cr)       fc2 weight
    # o_ref:   (1, C, 1)     sigmoid attention weights for this image
    # sum_acc: (C, 1) f32    running spatial sum   (VMEM scratch)
    # max_acc: (C, 1) f32    running spatial max   (VMEM scratch)
    s = pl.program_id(1)

    @pl.when(s == 0)
    def _init():
        sum_acc[...] = jnp.zeros_like(sum_acc)
        max_acc[...] = jnp.full_like(max_acc, -jnp.inf)

    xt = x_ref[0].astype(jnp.float32)                      # (C, THW)

    # Sum-pool on the MXU (otherwise idle): (C, THW) @ (THW, 1) -> (C, 1).
    # Max-pool is a lane (XLU) reduce.  Single pass over the tile.
    ones_col = jnp.ones((xt.shape[1], 1), jnp.float32)
    sum_acc[...] += jnp.dot(xt, ones_col, preferred_element_type=jnp.float32)
    max_acc[...] = jnp.maximum(max_acc[...],
                               jnp.max(xt, axis=-1, keepdims=True))

    @pl.when(s == pl.num_programs(1) - 1)
    def _finalize():
        # Stack [avg | max] into a single (C, 2) operand so the shared MLP is
        # one fc1 matmul + ReLU + one fc2 matmul (halves MXU round-trips).
        C = sum_acc.shape[0]
        col = jax.lax.broadcasted_iota(jnp.int32, (C, 2), 1)
        pooled = jnp.where(col == 0, sum_acc[...] * inv_hw, max_acc[...])
        h = jnp.maximum(
            jnp.dot(w1_ref[...], pooled, preferred_element_type=jnp.float32),
            0.0)                                           # (Cr, 2)
        y2 = jnp.dot(w2_ref[...], h, preferred_element_type=jnp.float32)  # (C, 2)
        y = jax.nn.sigmoid(y2[:, 0:1] + y2[:, 1:2])        # (C, 1)
        o_ref[0] = y.astype(o_ref.dtype)


def _pick_thw(hw, c, itemsize, target_bytes=2 << 20):
    """Largest spatial tile that is a multiple of 128, divides HW and keeps a
    (C, THW) buffer under ~target_bytes (double-buffer-safe even on v7x's
    64 MiB VMEM).  Falls back to the full HW when HW is not a 128-multiple
    (the last-dim tiling rule then requires THW == HW)."""
    if hw % 128 != 0:
        return hw
    cap = max(128, (target_bytes // (c * itemsize)) // 128 * 128)
    thw = min(hw, cap)
    while hw % thw != 0:
        thw -= 128
    return thw


def channel_attention(x_nchw, w1, w2):
    """x_nchw: (B, C, H, W); w1: (Cr, C, 1, 1); w2: (C, Cr, 1, 1).

    Returns (B, C, 1, 1) sigmoid channel-attention weights, matching the
    PyTorch module's forward exactly.
    """
    B, C, H, W = x_nchw.shape
    Cr = w1.shape[0]
    HW = H * W

    # Free reshapes only (no data movement): keep the NCHW channel order.
    x = x_nchw.reshape(B, C, HW)
    w1m = w1.reshape(Cr, C)
    w2m = w2.reshape(C, Cr)

    thw = _pick_thw(HW, C, x.dtype.itemsize)
    n_hw = HW // thw

    kernel = functools.partial(channel_attention_kernel, inv_hw=1.0 / HW)

    # NOTE: for C well below 128 (like the demo's C=32) the pooling pass only
    # fills C of the 128 lanes; lane-packing would recover occupancy but the
    # kernel stays HBM-bound either way, so it is left out for clarity.
    out = pl.pallas_call(
        kernel,
        out_shape=jax.ShapeDtypeStruct((B, C, 1), x.dtype),
        grid_spec=pltpu.PrefetchScalarGridSpec(
            num_scalar_prefetch=0,
            grid=(B, n_hw),
            in_specs=[
                pl.BlockSpec((1, C, thw), lambda b, s: (b, 0, s)),
                pl.BlockSpec((Cr, C), lambda b, s: (0, 0)),
                pl.BlockSpec((C, Cr), lambda b, s: (0, 0)),
            ],
            out_specs=pl.BlockSpec((1, C, 1), lambda b, s: (b, 0, 0)),
            scratch_shapes=[
                pltpu.VMEM((C, 1), jnp.float32),   # running sum
                pltpu.VMEM((C, 1), jnp.float32),   # running max
            ],
        ),
        compiler_params=pltpu.CompilerParams(
            dimension_semantics=("parallel", "arbitrary")),
        cost_estimate=pl.CostEstimate(
            flops=3 * B * C * HW,                  # pooling dominates (tiny)
            transcendentals=B * C,                 # sigmoid
            bytes_accessed=B * C * HW * x.dtype.itemsize
            + (2 * C * Cr + B * C) * x.dtype.itemsize,
        ),
    )(x, w1m, w2m)

    return out.reshape(B, C, 1, 1)


def channel_attention_ref(x_nchw, w1, w2):
    """Pure-JAX reference mirroring the PyTorch forward."""
    B, C, H, W = x_nchw.shape
    Cr = w1.shape[0]
    w1m = w1.reshape(Cr, C)
    w2m = w2.reshape(C, Cr)
    avg = jnp.mean(x_nchw, axis=(2, 3))            # (B, C)
    mx = jnp.max(x_nchw, axis=(2, 3))              # (B, C)

    def mlp(p):
        h = jnp.maximum(p @ w1m.T, 0.0)            # (B, Cr)
        return h @ w2m.T                           # (B, C)

    out = jax.nn.sigmoid(mlp(avg) + mlp(mx))
    return out.reshape(B, C, 1, 1)


if __name__ == "__main__":
    # Small shapes consistent with the module: in_planes must be >= 16
    # (fc1 reduces channels by a hardcoded factor of 16).
    B, C, H, W = 2, 32, 16, 16
    Cr = C // 16

    key = jax.random.PRNGKey(0)
    kx, k1, k2 = jax.random.split(key, 3)
    x = jax.random.normal(kx, (B, C, H, W), dtype=jnp.float32)
    # Same shapes as nn.Conv2d(..., kernel_size=1, bias=False) weights.
    w1 = jax.random.normal(k1, (Cr, C, 1, 1), dtype=jnp.float32) * 0.1
    w2 = jax.random.normal(k2, (C, Cr, 1, 1), dtype=jnp.float32) * 0.1

    out = channel_attention(x, w1, w2)
    out = jax.block_until_ready(out)

    ref = channel_attention_ref(x, w1, w2)
    assert out.shape == (B, C, 1, 1)
    assert jnp.allclose(out, ref, atol=1e-5, rtol=1e-5), (
        f"max abs err = {jnp.max(jnp.abs(out - ref))}")

    print("KERNEL_OK")
</pallas_src>

<mosaic_0001>
module attributes {stable_mosaic.version = 11 : i64} {
  func.func @channel_attention_kernel(%arg0: i32, %arg1: i32, %arg2: memref<1x32x256xf32, #tpu.memory_space<vmem>>, %arg3: memref<2x32xf32, #tpu.memory_space<vmem>>, %arg4: memref<32x2xf32, #tpu.memory_space<vmem>>, %arg5: memref<1x32x1xf32, #tpu.memory_space<vmem>>, %arg6: memref<32x1xf32, #tpu.memory_space<vmem>>, %arg7: memref<32x1xf32, #tpu.memory_space<vmem>>) attributes {dimension_semantics = [#tpu.dimension_semantics<parallel>, #tpu.dimension_semantics<arbitrary>], iteration_bounds = array<i64: 2, 1>, scalar_prefetch = 0 : i64, scratch_operands = 2 : i64, tpu.core_type = #tpu.core_type<tc>, window_params = [{transform_indices = @transform_0, window_bounds = array<i64: 1, 32, 256>}, {pipeline_mode = #tpu.pipeline_mode<synchronous>, transform_indices = @transform_1, window_bounds = array<i64: 2, 32>}, {pipeline_mode = #tpu.pipeline_mode<synchronous>, transform_indices = @transform_2, window_bounds = array<i64: 32, 2>}, {transform_indices = @transform_3, window_bounds = array<i64: 1, 32, 1>}]} {
    %c0_i32 = arith.constant 0 : i32
    %0 = arith.cmpi eq, %arg1, %c0_i32 : i32
    %1 = arith.extui %0 : i1 to i32
    %c0_i32_0 = arith.constant 0 : i32
    %2 = arith.cmpi ne, %1, %c0_i32_0 : i32
    scf.if %2 {
      %cst_15 = arith.constant 0.000000e+00 : f32
      %18 = vector.broadcast %cst_15 : f32 to vector<32x1xf32>
      %c0_16 = arith.constant 0 : index
      %c0_17 = arith.constant 0 : index
      %19 = vector.load %arg6[%c0_16, %c0_17] : memref<32x1xf32, #tpu.memory_space<vmem>>, vector<32x1xf32>
      tpu.vector_store %arg6[%c0_16, %c0_17], %18 {strides = array<i32>} : memref<32x1xf32, #tpu.memory_space<vmem>>, vector<32x1xf32>,
      %cst_18 = arith.constant 0xFF800000 : f32
      %20 = vector.broadcast %cst_18 : f32 to vector<32x1xf32>
      %c0_19 = arith.constant 0 : index
      %c0_20 = arith.constant 0 : index
      %21 = vector.load %arg7[%c0_19, %c0_20] : memref<32x1xf32, #tpu.memory_space<vmem>>, vector<32x1xf32>
      tpu.vector_store %arg7[%c0_19, %c0_20], %20 {strides = array<i32>} : memref<32x1xf32, #tpu.memory_space<vmem>>, vector<32x1xf32>,
    } else {
    }
    %c0 = arith.constant 0 : index
    %c0_1 = arith.constant 0 : index
    %c0_2 = arith.constant 0 : index
    %3 = vector.load %arg2[%c0, %c0_1, %c0_2] : memref<1x32x256xf32, #tpu.memory_space<vmem>>, vector<1x32x256xf32>
    %4 = vector.shape_cast %3 : vector<1x32x256xf32> to vector<32x256xf32>
    %cst = arith.constant 1.000000e+00 : f32
    %5 = vector.broadcast %cst : f32 to vector<256x1xf32>
    %c0_3 = arith.constant 0 : index
    %c0_4 = arith.constant 0 : index
    %6 = vector.load %arg6[%c0_3, %c0_4] : memref<32x1xf32, #tpu.memory_space<vmem>>, vector<32x1xf32>
    %cst_5 = arith.constant dense<0.000000e+00> : vector<32x1xf32>
    %7 = tpu.matmul %4, %5, %cst_5 {dimension_numbers = #tpu.dot_dimension_numbers<[1], [0], [0], [1], [0, 0, 1, 1], [], []>} : vector<32x256xf32>, vector<256x1xf32>, vector<32x1xf32> -> vector<32x1xf32>
    %8 = arith.addf %6, %7 : vector<32x1xf32>
    %c0_6 = arith.constant 0 : index
    %c0_7 = arith.constant 0 : index
    %9 = vector.load %arg6[%c0_6, %c0_7] : memref<32x1xf32, #tpu.memory_space<vmem>>, vector<32x1xf32>
    tpu.vector_store %arg6[%c0_6, %c0_7], %8 {strides = array<i32>} : memref<32x1xf32, #tpu.memory_space<vmem>>, vector<32x1xf32>,
    %c0_8 = arith.constant 0 : index
    %c0_9 = arith.constant 0 : index
    %10 = vector.load %arg7[%c0_8, %c0_9] : memref<32x1xf32, #tpu.memory_space<vmem>>, vector<32x1xf32>
    %cst_10 = arith.constant dense<0xFF800000> : vector<32xf32>
    %11 = vector.multi_reduction <maximumf>, %4, %cst_10 [1] : vector<32x256xf32> to vector<32xf32>
    %12 = vector.shape_cast %11 : vector<32xf32> to vector<32x1xf32>
    %13 = arith.maximumf %10, %12 : vector<32x1xf32>
    %c0_11 = arith.constant 0 : index
    %c0_12 = arith.constant 0 : index
    %14 = vector.load %arg7[%c0_11, %c0_12] : memref<32x1xf32, #tpu.memory_space<vmem>>, vector<32x1xf32>
    tpu.vector_store %arg7[%c0_11, %c0_12], %13 {strides = array<i32>} : memref<32x1xf32, #tpu.memory_space<vmem>>, vector<32x1xf32>,
    %c0_i32_13 = arith.constant 0 : i32
    %15 = arith.cmpi eq, %arg1, %c0_i32_13 : i32
    %16 = arith.extui %15 : i1 to i32
    %c0_i32_14 = arith.constant 0 : i32
    %17 = arith.cmpi ne, %16, %c0_i32_14 : i32
    scf.if %17 {
      %18 = tpu.iota {dimensions = array<i32: 1>} : vector<32x2xi32>
      %c0_i32_15 = arith.constant 0 : i32
      %19 = vector.broadcast %c0_i32_15 : i32 to vector<32x2xi32>
      %20 = arith.cmpi eq, %18, %19 : vector<32x2xi32>
      %c0_16 = arith.constant 0 : index
      %c0_17 = arith.constant 0 : index
      %21 = vector.load %arg6[%c0_16, %c0_17] : memref<32x1xf32, #tpu.memory_space<vmem>>, vector<32x1xf32>
      %cst_18 = arith.constant 3.906250e-03 : f32
      %22 = vector.broadcast %cst_18 : f32 to vector<32x1xf32>
      %23 = arith.mulf %21, %22 : vector<32x1xf32>
      %c0_19 = arith.constant 0 : index
      %c0_20 = arith.constant 0 : index
      %24 = vector.load %arg7[%c0_19, %c0_20] : memref<32x1xf32, #tpu.memory_space<vmem>>, vector<32x1xf32>
      %25 = vector.shape_cast %23 : vector<32x1xf32> to vector<32x1xf32>
      %26 = vector.broadcast %25 : vector<32x1xf32> to vector<32x2xf32>
      %27 = vector.shape_cast %24 : vector<32x1xf32> to vector<32x1xf32>
      %28 = vector.broadcast %27 : vector<32x1xf32> to vector<32x2xf32>
      %29 = arith.select %20, %26, %28 : vector<32x2xi1>, vector<32x2xf32>
      %c0_21 = arith.constant 0 : index
      %c0_22 = arith.constant 0 : index
      %30 = vector.load %arg3[%c0_21, %c0_22] : memref<2x32xf32, #tpu.memory_space<vmem>>, vector<2x32xf32>
      %cst_23 = arith.constant dense<0.000000e+00> : vector<2x2xf32>
      %31 = tpu.matmul %30, %29, %cst_23 {dimension_numbers = #tpu.dot_dimension_numbers<[1], [0], [0], [1], [0, 0, 1, 1], [], []>} : vector<2x32xf32>, vector<32x2xf32>, vector<2x2xf32> -> vector<2x2xf32>
      %cst_24 = arith.constant 0.000000e+00 : f32
      %32 = vector.broadcast %cst_24 : f32 to vector<2x2xf32>
      %33 = arith.maximumf %31, %32 : vector<2x2xf32>
      %c0_25 = arith.constant 0 : index
      %c0_26 = arith.constant 0 : index
      %34 = vector.load %arg4[%c0_25, %c0_26] : memref<32x2xf32, #tpu.memory_space<vmem>>, vector<32x2xf32>
      %cst_27 = arith.constant dense<0.000000e+00> : vector<32x2xf32>
      %35 = tpu.matmul %34, %33, %cst_27 {dimension_numbers = #tpu.dot_dimension_numbers<[1], [0], [0], [1], [0, 0, 1, 1], [], []>} : vector<32x2xf32>, vector<2x2xf32>, vector<32x2xf32> -> vector<32x2xf32>
      %36 = vector.extract_strided_slice %35 {offsets = [0, 0], sizes = [32, 1], strides = [1, 1]} : vector<32x2xf32> to vector<32x1xf32>
      %37 = vector.extract_strided_slice %35 {offsets = [0, 1], sizes = [32, 1], strides = [1, 1]} : vector<32x2xf32> to vector<32x1xf32>
      %38 = arith.addf %36, %37 : vector<32x1xf32>
      %39 = arith.negf %38 : vector<32x1xf32>
      %40 = math.exp %39 : vector<32x1xf32>
      %cst_28 = arith.constant 1.000000e+00 : f32
      %41 = vector.broadcast %cst_28 : f32 to vector<32x1xf32>
      %42 = arith.addf %41, %40 : vector<32x1xf32>
      %43 = arith.divf %41, %42 : vector<32x1xf32>
      %c0_29 = arith.constant 0 : index
      %c0_30 = arith.constant 0 : index
      %c0_31 = arith.constant 0 : index
      %44 = vector.load %arg5[%c0_29, %c0_30, %c0_31] : memref<1x32x1xf32, #tpu.memory_space<vmem>>, vector<1x32x1xf32>
      %45 = vector.shape_cast %44 : vector<1x32x1xf32> to vector<32x1xf32>
      %46 = vector.shape_cast %43 : vector<32x1xf32> to vector<1x32x1xf32>
      tpu.vector_store %arg5[%c0_29, %c0_30, %c0_31], %46 {strides = array<i32>} : memref<1x32x1xf32, #tpu.memory_space<vmem>>, vector<1x32x1xf32>,
    } else {
    }
    return
  }
  func.func @transform_0(%arg0: i32, %arg1: i32) -> (i32, i32, i32) {
    %c0_i32 = arith.constant 0 : i32
    %c0_i32_0 = arith.constant 0 : i32
    return %arg0, %c0_i32, %arg1 : i32, i32, i32
  }
  func.func @transform_1(%arg0: i32, %arg1: i32) -> (i32, i32) {
    %c0_i32 = arith.constant 0 : i32
    %c0_i32_0 = arith.constant 0 : i32
    %c0_i32_1 = arith.constant 0 : i32
    return %c0_i32, %c0_i32_0 : i32, i32
  }
  func.func @transform_2(%arg0: i32, %arg1: i32) -> (i32, i32) {
    %c0_i32 = arith.constant 0 : i32
    %c0_i32_0 = arith.constant 0 : i32
    %c0_i32_1 = arith.constant 0 : i32
    return %c0_i32, %c0_i32_0 : i32, i32
  }
  func.func @transform_3(%arg0: i32, %arg1: i32) -> (i32, i32, i32) {
    %c0_i32 = arith.constant 0 : i32
    %c0_i32_0 = arith.constant 0 : i32
    %c0_i32_1 = arith.constant 0 : i32
    return %arg0, %c0_i32, %c0_i32_0 : i32, i32, i32
  }
}

</mosaic_0001>

<bundles_post_ra>
// kernel: tpu_custom_call.1
= control target key start
LH: loop header
LB: loop body
LE: loop exit
PB: predicated region body
PF: predicated region fallthrough
CT: control target
= control target key end

     0   :  { %8 = vsyncpa [#allocation5], 0  ;;  %s1219_s0 = inlined_call_operand.hbm [shape: f32[2,32,256], index: 0, kind: input, shape index: {}]   ;;  %s1220_s1 = inlined_call_operand.vmem [shape: f32[2,32], index: 1, kind: input, shape index: {}]   ;;  %s1221_s2 = inlined_call_operand.vmem [shape: f32[32,2], index: 2, kind: input, shape index: {}]   ;;  %s1222_s3 = inlined_call_operand.vmem [shape: f32[2,32,1], index: 3, kind: output, shape index: {}]  }
   0x1   :  { %10 = vsyncpa [#allocation5 + $0x1], 0  ;;  %s1055_s12 = smov 0   ;;  %s1057_s13 = smov 0  }
   0x2   :  { %s1059_s14 = smov 0   ;;  %s1061_s15 = smov 0  }
   0x3   :  { %s1063_s16 = smov 0   ;;  %s1065_s17 = smov 0  }
   0x4 LB: > { %s721_s18 = sadd.s32 4294967295, %s1023_s17   ;;  %s28_s19 = sadd.s32 1, %s1019_s16  ;;  %s1023_s17 = sphi %s1065_s17, %s16_s17   ;;  %s1019_s16 = sphi %s1063_s16, %s1230_s16   ;;  %s1015_s15 = sphi %s1061_s15, %s1229_s15   ;;  %s1011_s14 = sphi %s1059_s14, %s1228_s14   ;;  %s1007_s13 = sphi %s1057_s13, %s1227_s13   ;;  %s1003_s12 = sphi %s1055_s12, %s1226_s12  }
   0x5   : > { %p30_p0 = scmp.ge.s32.totalorder %s28_s19, 2  ;;  %s37_s20 = sadd.s32 1, %s1011_s14 }
   0x6   : > { %p44_p1 = scmp.ne.s32.totalorder %s1011_s14, %s1007_s13  ;;  %p45_p2 = scmp.eq.s32.totalorder %s1023_s17, 0 }
   0x7   : > { %s1232_s19 = smov (%p30_p0, %s28_s19), 0  ;;  %p50_p4 = scmp.ne.s32.totalorder %s1007_s13, %s1003_s12 }
   0x8   : > { %p1091_p3 = por %p45_p2, %p44_p1  ;;  %s32_s22 = ssub.s32 %s1019_s16, %s1232_s19 }
   0x9   : > { %p51_p5 = scmp.eq.s32.totalorder %s721_s18, 0  ;;  %p35_p6 = scmp.eq.s32.totalorder %s32_s22, 0 }
   0xa   : > { %p847_p8 = scmp.lt.s32.totalorder %s1023_s17, 2  ;;  %s148_s25 = sand.u32 1, %s1011_s14  }
   0xb   : > { %p1098_p7 = por %p51_p5, %p50_p4  ;;  %s744_s26 = sshll.u32 %s1019_s16, 10 }
   0xc   : > { %s1104_s24 = scalar_select %p35_p6, %s1011_s14, %s37_s20  }
   0xd   : > { %s725_s27 = sshll.u32 %s148_s25, 6  ;;  %s1111_s30 = scalar_lea.hbm %s1219_s0, %s744_s26 }
   0xe   : > { %s152_s4 = scalar_lea.vmem [#allocation4], %s725_s27  ;;  %p1115_p9 = pnand %p847_p8, %p1091_p3 }
   0xf   : > { %s161_s5 = sshll.u32 %s152_s4, 4  ;;  %s1121_s7 = scalar_lea.sflag [#allocation5], %s148_s25  ;;  %s1119_s5 = int_to_ptr.vmem [resolvable:$true] %s161_s5 }
  0x10   : > { %s943_s8 = scalar_lea.hbm %s1111_s30, 1024  ;;  %p945_p11 = pneg %p1115_p9 }
  0x11   : > { %p944_p10 = scmp.ne.s32.totalorder %s1111_s30, %s943_s8  ;;  %s948_s11 = scalar_lea.hbm %s1219_s0, 2048 }
  0x12   : > { %p949_p0 = scmp.lt.u32.totalorder %s1111_s30, %s1219_s0  ;;  %p950_p1 = scmp.lt.u32.totalorder %s948_s11, %s943_s8 }
  0x13   : > { %p946_p12 = pnand %p945_p11, %p944_p10  ;;  %p952_p3 = scmp.lt.u32.totalorder %s943_s8, %s1111_s30 }
  0x14   : > { %p951_p2 = por %p950_p1, %p949_p0 }
  0x15   : > { %p947_p13 = pneg %p946_p12 }
  0x16   : > { %p953_p4 = por %p952_p3, %p951_p2 }
  0x18   : > { %p954_p5 = pnand %p953_p4, %p947_p13 }
  0x1a   : > { %957 = shalt.err (!%p954_p5)
}
  0x1b   : > { %s958_s20 = scalar_lea.vmem %s1119_s5, 1024  ;;  %s1025_s21 = smov [#allocation4]  }
  0x1c   : > { %p959_p6 = scmp.ne.s32.totalorder %s1119_s5, %s958_s20  ;;  %s963_s22 = sshll.u32 %s1025_s21, 4  ;;  %s964_s22 = int_to_ptr.vmem [resolvable:$false] %s963_s22 }
  0x1d   : > { %s965_s25 = scalar_lea.vmem %s964_s22, 2048  ;;  %p966_p12 = scmp.lt.s32.totalorder %s1119_s5, %s964_s22 }
  0x1e   : > { %p961_p8 = pnand %p959_p6, %p945_p11  ;;  %p967_p0 = scmp.lt.s32.totalorder %s965_s25, %s958_s20 }
  0x20   : > { %p962_p10 = pneg %p961_p8  ;;  %p968_p1 = por %p967_p0, %p966_p12 }
  0x22   : > { %p969_p2 = pnand %p968_p1, %p962_p10 }
  0x24   : > { %972 = shalt.err (!%p969_p2)
}
  0x25   : > { %s1026_s26 = smov 256   ;;  %s1027_s27 = smov 16  }
  0x26   : > { %846 = dma.hbm_to_vmem [thread:$0]  (!%p1115_p9), %s1111_s30, 1024, %s1119_s5, %s1121_s7, %s1026_s26, %s1026_s26, %s1027_s27  }
  0x27   : > { %p728_p11 = scmp.ge.s32.totalorder %s1023_s17, 1  ;;  %p169_p13 = scmp.lt.s32.totalorder %s1023_s17, 3 }
  0x29   : > { %p170_p3 = pnand %p728_p11, %p169_p13 }
  0x2a   : > { %s175_s28 = sand.u32 (!%p170_p3), 1, %s1007_s13  }
  0x2b   : > { %173 = sbr.rel (%p170_p3) target bundleno = 1049 (0x419), region = 32  ;;  %s729_s29 = sshll.u32 (!%p170_p3), %s175_s28, 6 }
  0x2c   : > { %s176_s4 = scalar_lea.sflag (!%p170_p3), [#allocation5], %s175_s28  ;;  %s179_s8 = scalar_lea.vmem (!%p170_p3), [#allocation4], %s729_s29 }
  0x32   : > { %998 = dma.done.wait (%p1098_p7), %s176_s4, 1024  }
  0x33   : > { %1000 = vsyncadd (%p1098_p7), %s176_s4, 4294966272  ;;  %v1028_v0 = vmov 1.0|1.0   ;;  %v222_v1 = vld [vmem:[%s179_s8 + $0x8] sm:$0xff]  ;;  %v221_v2 = vld [vmem:[%s179_s8] sm:$0xff]  ;;  %vm212_vm0 = vcmask 7168  }
  0x34   : > { %819 = vmatprep.subr.bf16.mxu0 %v1028_v0  ;;  %297 = vmatprep.mubr.f32.mxu0 %v222_v1  ;;  %v226_v3 = vld [vmem:[%s179_s8 + $0x28] sm:$0xff]  ;;  %v225_v4 = vld [vmem:[%s179_s8 + $0x20] sm:$0xff]  ;;  %v331_v5 = vmax.f32 %v221_v2, %v222_v1  ;;  %v224_v6 = vld [vmem:[%s179_s8 + $0x18] sm:$0xff]  ;;  %v1029_v13 = vmov 0.0   ;;  %v1030_v14 = vmov -inf   ;;  %v1031_v15 = vmov 0  }
  0x35   : > { %820 = vmatpush3.bf16.msra.mxu0 %v1028_v0  ;;  %v223_v7 = vld [vmem:[%s179_s8 + $0x10] sm:$0xff]  ;;  %v337_v8 = vmax.f32 %v225_v4, %v226_v3  ;;  %v228_v9 = vld [vmem:[%s179_s8 + $0x38] sm:$0xff]  ;;  %213 = vst.msk [vmem:[#allocation2] sm:$0xff] %vm212_vm0, %v1029_v13  ;;  %214 = vst.msk [vmem:[#allocation2 + $0x8] sm:$0xff] %vm212_vm0, %v1029_v13  ;;  %911 = vset.pattern.permute.xlu1 %v1031_v15  ;;  %v1032_v57 = vmov 0.0|0.0   ;;  %vm1033_vm1 = vmmov 0   ;;  %v354_v1 = vlaneseq }
  0x36   : > { %821 = vmatprep.subr.bf16.mxu0 %v1028_v0  ;;  %v227_v10 = vld [vmem:[%s179_s8 + $0x30] sm:$0xff]  ;;  %332 = vmax.xlane.f32.xlu0 %v331_v5  ;;  %v334_v11 = vmax.f32 %v223_v7, %v224_v6  ;;  %215 = vst.msk [vmem:[#allocation2 + $0x10] sm:$0xff] %vm212_vm0, %v1029_v13  ;;  %216 = vst.msk [vmem:[#allocation2 + $0x18] sm:$0xff] %vm212_vm0, %v1029_v13  ;;  %vm414_vm3 = vcmask 261120   ;;  %vm493_vm4 = vcmask 15360   ;;  %vm506_vm5 = vcmask 1041408  }
  0x37   : > { %338 = vmax.xlane.f32.xlu1 %v337_v8  ;;  %v340_v12 = vmax.f32 %v227_v10, %v228_v9  ;;  %217 = vst.msk [vmem:[#allocation3] sm:$0xff] %vm212_vm0, %v1030_v14  ;;  %218 = vst.msk [vmem:[#allocation3 + $0x8] sm:$0xff] %vm212_vm0, %v1030_v14  ;;  %905 = vset.pattern.permute.xlu0 %v1031_v15  ;;  %s1034_s20 = smov 127   ;;  %p203_p7 = scmp.lt.s32.totalorder %s1015_s15, 1 }
  0x38   : > { %219 = vst.msk [vmem:[#allocation3 + $0x10] sm:$0xff] %vm212_vm0, %v1030_v14  ;;  %220 = vst.msk [vmem:[#allocation3 + $0x18] sm:$0xff] %vm212_vm0, %v1030_v14  ;;  %835 = vmatprep.subr.bf16.mxu1 %v1032_v57  ;;  %808 = vmatprep.mubr.msk.f32.mxu1 %vm1033_vm1, %v1029_v13 }
  0x39   : > { %822 = vmatpush3.bf16.msra.mxu0 %v1028_v0  ;;  %s1234_s15 = smov (!%p203_p7, %s1015_s15), 1 }
  0x3a   : > { %823 = vmatprep.subr.bf16.mxu0 %v1028_v0  ;;  %335 = vmax.xlane.f32.xlu0 %v334_v11  ;;  %s745_s21 = sshll.u32 %s1234_s15, 5 }
  0x3b   : > { %341 = vmax.xlane.f32.xlu1 %v340_v12  ;;  %s207_s26 = scalar_lea.vmem %s1222_s3, %s745_s21 }
  0x3c   : > { %v229_v32 = vld [vmem:[#allocation2] sm:$0xff]  ;;  %v230_v37 = vld [vmem:[#allocation2 + $0x8] sm:$0xff] }
  0x3d   : > { %824 = vmatpush3.bf16.msra.mxu0 %v1028_v0  ;;  %v231_v42 = vld [vmem:[#allocation2 + $0x10] sm:$0xff]  ;;  %v232_v47 = vld [vmem:[#allocation2 + $0x18] sm:$0xff] }
  0x3e   : > { %825 = vmatprep.subr.bf16.mxu0 %v1028_v0  ;;  %v327_v16 = vld [vmem:[#allocation3] sm:$0xff]  ;;  %v328_v21 = vld [vmem:[#allocation3 + $0x8] sm:$0xff] }
  0x3f   : > { %v329_v17 = vld [vmem:[#allocation3 + $0x10] sm:$0xff]  ;;  %v330_v23 = vld [vmem:[#allocation3 + $0x18] sm:$0xff] }
  0x41   : > { %826 = vmatpush3.bf16.msra.mxu0 %v1028_v0 }
  0x42   : > { %827 = vmatprep.subr.bf16.mxu0 %v1028_v0 }
  0x45   : > { %828 = vmatpush3.bf16.msra.mxu0 %v1028_v0 }
  0x46   : > { %829 = vmatprep.subr.bf16.mxu0 %v1028_v0 }
  0x49   : > { %830 = vmatpush3.bf16.msra.mxu0 %v1028_v0 }
  0x4a   : > { %831 = vmatprep.subr.bf16.mxu0 %v1028_v0 }
  0x4d   : > { %832 = vmatpush3.bf16.msra.mxu0 %v1028_v0 }
  0x4e   : > { %833 = vmatprep.subr.bf16.mxu0 %v1028_v0 }
  0x51   : > { %834 = vmatpush3.bf16.msra.mxu0 %v1028_v0 }
  0x54   : > { %298 = vmatmul.mubr.f32.vlgmr.msra.gmra.mrb[0].mxu0 %v221_v2 }
  0x55   : > { %302 = vmatprep.mubr.f32.mxu0 %v224_v6 }
  0x58   : > { %303 = vmatmul.mubr.f32.gmra.mrb[2].mxu0 %v223_v7 }
  0x59   : > { %307 = vmatprep.mubr.f32.mxu0 %v226_v3  ;;  %v355_v3 = vand.u32 127, %v354_v1 }
  0x5b   : > { %vm356_vm2 = vcmp.eq.s32.totalorder %v355_v3, 0 }
  0x5c   : > { %308 = vmatmul.mubr.f32.gmra.mrb[4].mxu0 %v225_v4 }
  0x5d   : > { %312 = vmatprep.mubr.f32.mxu0 %v228_v9 }
  0x60   : > { %313 = vmatmul.mubr.f32.gmra.mrb[6].mxu0 %v227_v10 }
  0xc3   : > { %v333_v18 = vpop.xlane.xlu0 %332 }
  0xc4   : > { %v343_v19 = vmax.f32 %v327_v16, %v333_v18  ;;  %v339_v20 = vpop.xlane.xlu1 %338 }
  0xc5   : > { %v345_v22 = vmax.f32 %v329_v17, %v339_v20 }
  0xc6   : > { %347 = vst.msk [vmem:[#allocation3] sm:$0xff] %vm212_vm0, %v343_v19 }
  0xc7   : > { %v336_v24 = vpop.xlane.xlu0 %335  ;;  %349 = vst.msk [vmem:[#allocation3 + $0x10] sm:$0xff] %vm212_vm0, %v345_v22  ;;  %v489_v22 = vld [vmem:[%s1221_s2] sm:$0xff] }
  0xc8   : > { %v344_v25 = vmax.f32 %v328_v21, %v336_v24  ;;  %v342_v26 = vpop.xlane.xlu1 %341  ;;  %v413_v21 = vld [vmem:[%s1220_s1] sm:$0x3] }
  0xc9   : > { %v346_v27 = vmax.f32 %v330_v23, %v342_v26  ;;  %v490_v26 = vld [vmem:[%s1221_s2 + $0x8] sm:$0xff] }
  0xca   : > { %348 = vst.msk [vmem:[#allocation3 + $0x8] sm:$0xff] %vm212_vm0, %v344_v25 }
  0xcb   : > { %350 = vst.msk [vmem:[#allocation3 + $0x18] sm:$0xff] %vm212_vm0, %v346_v27  ;;  %v491_v27 = vld [vmem:[%s1221_s2 + $0x10] sm:$0xff] }
  0xcd   : > { %v365_v28 = vld [vmem:[#allocation3] sm:$0xff] }
  0xce   : > { %v367_v62 = vld [vmem:[#allocation3 + $0x10] sm:$0xff] }
  0xd1   : > { %v366_v29 = vld [vmem:[#allocation3 + $0x8] sm:$0xff] }
  0xd2   : > { %v912_v30 = vpack.i.bf16 %v366_v29, %v365_v28  ;;  %v368_v63 = vld [vmem:[#allocation3 + $0x18] sm:$0xff] }
  0xd3   : > { %v922_v0 = vpack.i.bf16 %v368_v63, %v367_v62  ;;  %v492_v28 = vld [vmem:[%s1221_s2 + $0x18] sm:$0xff] }
  0xd4   : > { %913 = vperm.xlu1 %911, %v912_v30  }
 0x127   : > { %v778_v31 = vpop.f32.mrb[0].mxu0 }
 0x128   : > { %v779_v33 = vpop.f32.mrb[1].mxu0 }
 0x129   : > { %v780_v34 = vadd.f32 %v779_v33, %v778_v31 }
 0x12b   : > { %v318_v35 = vadd.f32 %v780_v34, %v229_v32  ;;  %v781_v36 = vpop.f32.mrb[2].mxu0 }
 0x12c   : > { %v782_v38 = vpop.f32.mrb[3].mxu0 }
 0x12d   : > { %323 = vst.msk [vmem:[#allocation2] sm:$0xff] %vm212_vm0, %v318_v35  ;;  %v783_v39 = vadd.f32 %v782_v38, %v781_v36 }
 0x12f   : > { %v319_v40 = vadd.f32 %v783_v39, %v230_v37  ;;  %v784_v41 = vpop.f32.mrb[4].mxu0 }
 0x130   : > { %v785_v43 = vpop.f32.mrb[5].mxu0 }
 0x131   : > { %324 = vst.msk [vmem:[#allocation2 + $0x8] sm:$0xff] %vm212_vm0, %v319_v40  ;;  %v786_v44 = vadd.f32 %v785_v43, %v784_v41 }
 0x133   : > { %v320_v45 = vadd.f32 %v786_v44, %v231_v42  ;;  %v787_v46 = vpop.f32.mrb[6].mxu0 }
 0x134   : > { %v788_v48 = vpop.f32.mrb[7].mxu0  ;;  %v357_v50 = vld [vmem:[#allocation2] sm:$0xff] }
 0x135   : > { %325 = vst.msk [vmem:[#allocation2 + $0x10] sm:$0xff] %vm212_vm0, %v320_v45  ;;  %v789_v49 = vadd.f32 %v788_v48, %v787_v46  ;;  %v361_v53 = vmul.f32 0.00390625, %v357_v50 }
 0x137   : > { %v321_v51 = vadd.f32 %v789_v49, %v232_v47 }
 0x138   : > { %v358_v52 = vld [vmem:[#allocation2 + $0x8] sm:$0xff] }
 0x139   : > { %326 = vst.msk [vmem:[#allocation2 + $0x18] sm:$0xff] %vm212_vm0, %v321_v51  ;;  %v362_v54 = vmul.f32 0.00390625, %v358_v52 }
 0x13b   : > { %v906_v55 = vpack.i.bf16 %v362_v54, %v361_v53 }
 0x13c   : > { %v359_v56 = vld [vmem:[#allocation2 + $0x10] sm:$0xff] }
 0x13d   : > { %907 = vperm.xlu0 %905, %v906_v55   ;;  %v363_v59 = vmul.f32 0.00390625, %v359_v56 }
 0x140   : > { %v360_v58 = vld [vmem:[#allocation2 + $0x18] sm:$0xff] }
 0x141   : > { %v364_v60 = vmul.f32 0.00390625, %v360_v58 }
 0x143   : > { %v917_v61 = vpack.i.bf16 %v364_v60, %v363_v59 }
 0x145   : > { %918 = vperm.xlu1 %911, %v917_v61  }
 0x149   : > { %923 = vperm.xlu1 %911, %v922_v0  }
 0x153   : > { %v914_v2 = vpop.permute.xlu1 %913 }
 0x154   : > { %v916_v4 = vunpack.i.h.bf16 %v914_v2  ;;  %v915_v5 = vunpack.i.l.bf16 %v914_v2 }
 0x1bc   : > { %v908_v6 = vpop.permute.xlu0 %907 }
 0x1bd   : > { %v910_v7 = vunpack.i.h.bf16 %v908_v6  ;;  %v909_v8 = vunpack.i.l.bf16 %v908_v6 }
 0x1bf   : > { %v409_v9 = vsel %vm356_vm2, %v909_v8, %v915_v5  ;;  %v410_v10 = vsel %vm356_vm2, %v910_v7, %v916_v4 }
 0x1c0   : > { %v836_v11 = vpack.c.bf16 %v410_v10, %v409_v9 }
 0x1c2   : > { %837 = vmatpush3.bf16.msra.mxu1 %v836_v11 }
 0x1c3   : > { %838 = vmatprep.subr.bf16.mxu1 %v1032_v57 }
 0x1c4   : > { %v919_v12 = vpop.permute.xlu1 %918 }
 0x1c5   : > { %v921_v15 = vunpack.i.h.bf16 %v919_v12  ;;  %v920_v16 = vunpack.i.l.bf16 %v919_v12 }
 0x1c8   : > { %v924_v14 = vpop.permute.xlu1 %923 }
 0x1c9   : > { %v926_v17 = vunpack.i.h.bf16 %v924_v14  ;;  %v925_v13 = vunpack.i.l.bf16 %v924_v14 }
 0x1cb   : > { %v411_v18 = vsel %vm356_vm2, %v920_v16, %v925_v13  ;;  %v412_v19 = vsel %vm356_vm2, %v921_v15, %v926_v17 }
 0x1cc   : > { %v839_v20 = vpack.c.bf16 %v412_v19, %v411_v18 }
 0x1ce   : > { %840 = vmatpush3.bf16.msra.mxu1 %v839_v20 }
 0x1d1   : > { %809 = vmatmul.mubr.msk.f32.vlgmr.msra.gmra.mrb[0].mxu1 %vm414_vm3, %v413_v21 }
 0x1d2   : > { %813 = vmatprep.mubr.msk.f32.mxu1 %vm493_vm4, %v489_v22 }
 0x2a4   : > { %v484_v23 = vpop.f32.mrb[0].mxu1 }
 0x2a5   : > { %v488_v24 = vmax.f32 %v484_v23, 0.0  ;;  %v810_v25 = vpop.f32.mrb[1].mxu1 }
 0x2a7   : > { %811 = vmatprep.subr.msk.mxu1 %vm506_vm5, %v488_v24 }
 0x2a8   : > { %812 = vmatpush3.msk.msra.mxu1 %vm506_vm5, %v488_v24 }
 0x2a9   : > { %814 = vmatmul.mubr.msk.f32.vlgmr.msra.gmra.mrb[2].mxu1 %vm493_vm4, %v490_v26 }
 0x2aa   : > { %816 = vmatprep.mubr.msk.f32.mxu1 %vm493_vm4, %v491_v27 }
 0x2ad   : > { %817 = vmatmul.mubr.msk.f32.gmra.mrb[4].mxu1 %vm493_vm4, %v492_v28 }
 0x37c   : > { %v815_v29 = vpop.f32.mrb[2].mxu1 }
 0x37d   : > { %601 = vrot.lane.b32.xlu1 %v815_v29, %s1034_s20  ;;  %v576_v30 = vpop.f32.mrb[3].mxu1 }
 0x380   : > { %v818_v31 = vpop.f32.mrb[4].mxu1 }
 0x381   : > { %599 = vrot.lane.b32.xlu1 %v576_v30, %s1034_s20  ;;  %v586_v32 = vpop.f32.mrb[5].mxu1 }
 0x385   : > { %603 = vrot.lane.b32.xlu1 %v586_v32, %s1034_s20 }
 0x389   : > { %605 = vrot.lane.b32.xlu1 %v818_v31, %s1034_s20 }
 0x3ef   : > { %v602_v33 = vpop.permute.xlu1 %601 }
 0x3f0   : > { %v612_v34 = vadd.f32 %v815_v29, %v602_v33 }
 0x3f2   : > { %v739_v35 = vmul.f32 -1.442695, %v612_v34 }
 0x3f3   : > { %v600_v36 = vpop.permute.xlu1 %599 }
 0x3f4   : > { %927 = vpow2.f32 %v739_v35  ;;  %v611_v37 = vadd.f32 %v600_v36, %v576_v30 }
 0x3f6   : > { %v738_v38 = vmul.f32 -1.442695, %v611_v37 }
 0x3f7   : > { %v604_v39 = vpop.permute.xlu1 %603 }
 0x3f8   : > { %929 = vpow2.f32 %v738_v38  ;;  %v613_v40 = vadd.f32 %v604_v39, %v586_v32 }
 0x3fa   : > { %v740_v41 = vmul.f32 -1.442695, %v613_v40 }
 0x3fb   : > { %v606_v42 = vpop.permute.xlu1 %605 }
 0x3fc   : > { %931 = vpow2.f32 %v740_v41  ;;  %v614_v43 = vadd.f32 %v818_v31, %v606_v42 }
 0x3fe   : > { %v928_v44 = vpop.eup %927  ;;  %v741_v45 = vmul.f32 -1.442695, %v614_v43 }
 0x3ff   : > { %v628_v46 = vadd.f32 1.0, %v928_v44 }
 0x400   : > { %933 = vpow2.f32 %v741_v45 }
 0x401   : > { %935 = vrcp.f32 %v628_v46 }
 0x402   : > { %v930_v47 = vpop.eup %929 }
 0x403   : > { %v627_v48 = vadd.f32 1.0, %v930_v47 }
 0x405   : > { %937 = vrcp.f32 %v627_v48 }
 0x406   : > { %v932_v49 = vpop.eup %931 }
 0x407   : > { %v629_v50 = vadd.f32 1.0, %v932_v49 }
 0x409   : > { %939 = vrcp.f32 %v629_v50 }
 0x40a   : > { %v934_v51 = vpop.eup %933 }
 0x40b   : > { %v936_v52 = vpop.eup %935  ;;  %v630_v53 = vadd.f32 1.0, %v934_v51 }
 0x40c   : > { %640 = vst.msk [vmem:[%s207_s26 + $0x8] sm:$0xff] %vm212_vm0, %v936_v52 }
 0x40d   : > { %941 = vrcp.f32 %v630_v53 }
 0x40f   : > { %v938_v54 = vpop.eup %937 }
 0x410   : > { %639 = vst.msk [vmem:[%s207_s26] sm:$0xff] %vm212_vm0, %v938_v54 }
 0x413   : > { %v940_v55 = vpop.eup %939 }
 0x414   : > { %641 = vst.msk [vmem:[%s207_s26 + $0x10] sm:$0xff] %vm212_vm0, %v940_v55 }
 0x417   : > { %v942_v56 = vpop.eup %941 }
 0x418   : > { %642 = vst.msk [vmem:[%s207_s26 + $0x18] sm:$0xff] %vm212_vm0, %v942_v56 }
 0x419 PF: > { %s16_s17 = sadd.s32 1, %s1023_s17   ;;  %s1226_s12 = smov %s1007_s13 }
 0x41a   : > { %p13_p9 = scmp.ge.s32.totalorder %s16_s17, 4   ;;  %s1227_s13 = smov %s1011_s14 }
 0x41b   : > { %s1228_s14 = smov %s1104_s24  ;;  %s1229_s15 = smov %s1019_s16 }
 0x41c   : > { %s1230_s16 = smov %s1232_s19  ;;  %15 = sbr.rel (!%p13_p9) target bundleno = 4 (0x4), region = 80 }
 0x423   :  { %664 = vsyncpa [#allocation5], 1 }
 0x424   :  { %666 = vsyncpa [#allocation5 + $0x1], 1 }

</bundles_post_ra>
